<compile_context>
chip_gen: v6e
topology: v6e:2x2x1
jax: 0.10.0
libtpu: 0.0.40
codegen_flags: <defaults>
</compile_context>

<pallas_src>
from functools import partial

import jax
import jax.numpy as jnp
from jax import lax
from jax.experimental import pallas as pl
from jax.experimental.pallas import tpu as pltpu


# ---------------------------------------------------------------------------
# Path A: one or more whole ghost chunks per grid step.
# ---------------------------------------------------------------------------
def gbn_kernel(x_ref, w_ref, b_ref, o_ref, *, eps, chunk_size, chunks_per_block):
    # x_ref / o_ref: (chunks_per_block * chunk_size, C, H*W)
    # w_ref / b_ref: (1, C, 1)
    w = w_ref[...].astype(jnp.float32)
    b = b_ref[...].astype(jnp.float32)
    hw = x_ref.shape[2]
    n = float(chunk_size * hw)  # elements per channel in one ghost batch
    f32_input = jnp.dtype(x_ref.dtype) == jnp.dtype(jnp.float32)

    def body(k, carry):
        start = pl.multiple_of(k * chunk_size, chunk_size)
        rows = pl.ds(start, chunk_size)
        xs = x_ref[rows, :, :]                                   # (chunk, C, HW)
        x = xs.astype(jnp.float32)
        # Single pass: sum & sum-of-squares; rows first (VALU), lanes last (XLU).
        row_sum = jnp.sum(x, axis=0, keepdims=True)              # (1, C, HW)
        row_sq = jnp.sum(x * x, axis=0, keepdims=True)           # (1, C, HW)
        s = jnp.sum(row_sum, axis=-1, keepdims=True)             # (1, C, 1)
        sq = jnp.sum(row_sq, axis=-1, keepdims=True)             # (1, C, 1)
        mean = s / n
        var = jnp.maximum(sq / n - mean * mean, 0.0)             # biased var
        inv_std = lax.rsqrt(var + eps)
        scale = w * inv_std                                      # (1, C, 1)
        shift = b - mean * scale
        if f32_input:
            y = x * scale + shift
        else:
            # bf16 normalize FMA (v6e/v7x bf16 VALU: 2x rate, half vreg traffic).
            # TODO(synk): keep an f32 normalize on v5e (no bf16 VALU there).
            y = xs * scale.astype(xs.dtype) + shift.astype(xs.dtype)
        o_ref[rows, :, :] = y.astype(o_ref.dtype)
        return carry

    unroll = True if chunks_per_block <= 8 else 4
    lax.fori_loop(0, chunks_per_block, body, 0, unroll=unroll)


# ---------------------------------------------------------------------------
# Path B: a single ghost chunk is too big for one block -> split its rows
# across a second reduction axis.  grid = (num_chunks, 2 phases, row_tiles).
# Phase 0 accumulates per-channel sum/sumsq into VMEM scratch; phase 1
# normalizes and writes.  The output index_map keeps the output block
# resident during phase 0 so the output is written exactly once (2R + 1W).
# ---------------------------------------------------------------------------
def gbn_split_kernel(x_ref, w_ref, b_ref, o_ref, sum_ref, sq_ref, *,
                     eps, n_per_channel):
    p = pl.program_id(1)
    r = pl.program_id(2)
    f32_input = jnp.dtype(x_ref.dtype) == jnp.dtype(jnp.float32)

    @pl.when(jnp.logical_and(p == 0, r == 0))
    def _():
        sum_ref[...] = jnp.zeros_like(sum_ref)
        sq_ref[...] = jnp.zeros_like(sq_ref)

    @pl.when(p == 0)
    def _():
        x = x_ref[...].astype(jnp.float32)                       # (rt, C, HW)
        row_sum = jnp.sum(x, axis=0, keepdims=True)
        row_sq = jnp.sum(x * x, axis=0, keepdims=True)
        sum_ref[...] += jnp.sum(row_sum, axis=-1, keepdims=True)
        sq_ref[...] += jnp.sum(row_sq, axis=-1, keepdims=True)

    @pl.when(p == 1)
    def _():
        mean = sum_ref[...] / n_per_channel
        var = jnp.maximum(sq_ref[...] / n_per_channel - mean * mean, 0.0)
        inv_std = lax.rsqrt(var + eps)
        scale = w_ref[...].astype(jnp.float32) * inv_std
        shift = b_ref[...].astype(jnp.float32) - mean * scale
        if f32_input:
            y = x_ref[...].astype(jnp.float32) * scale + shift
        else:
            xs = x_ref[...]
            y = xs * scale.astype(xs.dtype) + shift.astype(xs.dtype)
        o_ref[...] = y.astype(o_ref.dtype)


# ---------------------------------------------------------------------------
# Sizing helpers.
# ---------------------------------------------------------------------------
def _vmem_budget():
    """Generation-aware (target_block_bytes, vmem_limit_bytes)."""
    try:
        cap = pltpu.get_tpu_info().vmem_capacity_bytes
    except Exception:  # pragma: no cover - conservative fallback
        cap = 64 * 1024 * 1024  # v7x per-TC; safe everywhere
    vmem_limit = min(int(cap * 3 // 4), 96 * 1024 * 1024)
    # 4 MiB tiles for 64 MiB VMEM (v7x), 8 MiB for 128 MiB (v5e/v6e).
    target_block = 8 * 1024 * 1024 if cap >= 128 * 1024 * 1024 else 4 * 1024 * 1024
    return target_block, vmem_limit


def _pick_chunks_per_block(num_chunks, chunk_bytes, target_bytes):
    """Largest K dividing num_chunks with K*chunk_bytes <= target.
    Prefer an even grid length (v7x has 2 TCs on the 'parallel' axis),
    then any grid >= 2, then the largest feasible K."""
    k_cap = max(1, target_bytes // max(chunk_bytes, 1))
    cands = [k for k in range(1, num_chunks + 1)
             if num_chunks % k == 0 and k <= k_cap]
    if not cands:
        return 1
    even = [k for k in cands if (num_chunks // k) % 2 == 0]
    if even:
        return max(even)
    multi = [k for k in cands if num_chunks // k >= 2]
    if multi:
        return max(multi)
    return max(cands)


# ---------------------------------------------------------------------------
# Wrapper.
# ---------------------------------------------------------------------------
def ghost_batch_norm(x_nchw, weight, bias, *, chunk_size=16, eps=1e-5,
                     target_block_bytes=None):
    B, C, H, W = x_nchw.shape
    # TODO(synk): handle a ragged last chunk (B % chunk_size != 0) like torch.split.
    assert B % chunk_size == 0, "this kernel assumes B divisible by chunk_size"
    num_chunks = B // chunk_size
    HW = H * W

    # Free reshape (no transpose): channels on sublanes, spatial on lanes.
    # TODO(synk): if producer/consumer layout were free to choose, a
    # (num_chunks, C, chunk_size*HW) layout would make the lane axis a large
    # multiple of 128 for small feature maps (7x7/8x8); a standalone repack
    # would add an HBM pass, so it is not done here.
    x = x_nchw.reshape(B, C, HW)
    w = weight.reshape(1, C, 1).astype(jnp.float32)
    b = bias.reshape(1, C, 1).astype(jnp.float32)

    auto_target, vmem_limit = _vmem_budget()
    if target_block_bytes is None:
        target_block_bytes = auto_target

    chunk_bytes = chunk_size * C * HW * x.dtype.itemsize

    if chunk_bytes > target_block_bytes:
        # ---- Path B: split one chunk's rows across a reduction grid axis ----
        row_bytes = C * HW * x.dtype.itemsize
        rt = 1
        for cand in range(1, chunk_size + 1):
            if chunk_size % cand == 0 and cand * row_bytes <= target_block_bytes:
                rt = cand
        nrt = chunk_size // rt
        grid = (num_chunks, 2, nrt)
        out = pl.pallas_call(
            partial(gbn_split_kernel, eps=eps,
                    n_per_channel=float(chunk_size * HW)),
            out_shape=jax.ShapeDtypeStruct((B, C, HW), x_nchw.dtype),
            grid=grid,
            in_specs=[
                pl.BlockSpec((rt, C, HW), lambda i, p, r: (i * nrt + r, 0, 0)),
                pl.BlockSpec((1, C, 1), lambda i, p, r: (0, 0, 0)),
                pl.BlockSpec((1, C, 1), lambda i, p, r: (0, 0, 0)),
            ],
            # During phase 0 the output block index stays constant, so the
            # (unwritten) output block stays resident; phase 1 fills it and it
            # is written back exactly once.
            out_specs=pl.BlockSpec((rt, C, HW),
                                   lambda i, p, r: (i * nrt + p * r, 0, 0)),
            scratch_shapes=[pltpu.VMEM((1, C, 1), jnp.float32),
                            pltpu.VMEM((1, C, 1), jnp.float32)],
            compiler_params=pltpu.CompilerParams(
                dimension_semantics=("parallel", "arbitrary", "arbitrary"),
                vmem_limit_bytes=vmem_limit,
            ),
        )(x, w, b)
    else:
        # ---- Path A: K whole chunks per grid step ----
        K = _pick_chunks_per_block(num_chunks, chunk_bytes, target_block_bytes)
        block_rows = K * chunk_size
        grid = (num_chunks // K,)
        out = pl.pallas_call(
            partial(gbn_kernel, eps=eps, chunk_size=chunk_size,
                    chunks_per_block=K),
            out_shape=jax.ShapeDtypeStruct((B, C, HW), x_nchw.dtype),
            grid=grid,
            in_specs=[
                pl.BlockSpec((block_rows, C, HW), lambda i: (i, 0, 0)),
                pl.BlockSpec((1, C, 1), lambda i: (0, 0, 0)),
                pl.BlockSpec((1, C, 1), lambda i: (0, 0, 0)),
            ],
            out_specs=pl.BlockSpec((block_rows, C, HW), lambda i: (i, 0, 0)),
            compiler_params=pltpu.CompilerParams(
                dimension_semantics=("parallel",),
                vmem_limit_bytes=vmem_limit,
            ),
        )(x, w, b)

    return out.reshape(B, C, H, W)


def ghost_batch_norm_ref(x_nchw, weight, bias, *, chunk_size=16, eps=1e-5):
    """Pure-JAX reference matching PyTorch GhostBatchNorm in training mode."""
    B, C, H, W = x_nchw.shape
    outs = []
    for s in range(0, B, chunk_size):
        xc = x_nchw[s:s + chunk_size].astype(jnp.float32)
        mean = jnp.mean(xc, axis=(0, 2, 3), keepdims=True)
        var = jnp.mean((xc - mean) ** 2, axis=(0, 2, 3), keepdims=True)
        y = (xc - mean) / jnp.sqrt(var + eps)
        y = y * weight.reshape(1, C, 1, 1) + bias.reshape(1, C, 1, 1)
        outs.append(y.astype(x_nchw.dtype))
    return jnp.concatenate(outs, axis=0)


if __name__ == "__main__":
    key = jax.random.PRNGKey(0)
    kx, kw, kb = jax.random.split(key, 3)

    B, C, H, W = 32, 4, 8, 8          # 2 ghost batches of chunk_size=16
    chunk_size = 16

    x = jax.random.normal(kx, (B, C, H, W), dtype=jnp.float32)
    weight = 1.0 + 0.1 * jax.random.normal(kw, (C,), dtype=jnp.float32)
    bias = 0.1 * jax.random.normal(kb, (C,), dtype=jnp.float32)

    ref = ghost_batch_norm_ref(x, weight, bias, chunk_size=chunk_size)

    # Path A (whole chunks per block).
    out = ghost_batch_norm(x, weight, bias, chunk_size=chunk_size)
    out = jax.block_until_ready(out)
    assert out.shape == (B, C, H, W)
    assert jnp.allclose(out, ref, atol=2e-5, rtol=2e-5), (
        float(jnp.max(jnp.abs(out - ref))))

    # Path B (forced HW/row-split reduction with a tiny block budget).
    out_split = ghost_batch_norm(x, weight, bias, chunk_size=chunk_size,
                                 target_block_bytes=8 * 1024)
    out_split = jax.block_until_ready(out_split)
    assert jnp.allclose(out_split, ref, atol=2e-5, rtol=2e-5), (
        float(jnp.max(jnp.abs(out_split - ref))))

    # bf16 input exercises the low-precision normalize path (stats stay f32).
    x_bf16 = x.astype(jnp.bfloat16)
    out_bf16 = ghost_batch_norm(x_bf16, weight, bias, chunk_size=chunk_size)
    out_bf16 = jax.block_until_ready(out_bf16)
    ref_bf16 = ghost_batch_norm_ref(x_bf16, weight, bias, chunk_size=chunk_size)
    assert jnp.allclose(out_bf16.astype(jnp.float32),
                        ref_bf16.astype(jnp.float32), atol=1e-1, rtol=1e-1), (
        float(jnp.max(jnp.abs(out_bf16.astype(jnp.float32)
                              - ref_bf16.astype(jnp.float32)))))

    print("KERNEL_OK")
</pallas_src>

<mosaic_0001>
module attributes {stable_mosaic.version = 11 : i64} {
  func.func @gbn_kernel(%arg0: i32, %arg1: memref<16x4x64xf32, #tpu.memory_space<vmem>>, %arg2: memref<1x4x1xf32, #tpu.memory_space<vmem>>, %arg3: memref<1x4x1xf32, #tpu.memory_space<vmem>>, %arg4: memref<16x4x64xf32, #tpu.memory_space<vmem>>) attributes {dimension_semantics = [#tpu.dimension_semantics<parallel>], iteration_bounds = array<i64: 2>, scalar_prefetch = 0 : i64, scratch_operands = 0 : i64, tpu.core_type = #tpu.core_type<tc>, window_params = [{transform_indices = @transform_0, window_bounds = array<i64: 16, 4, 64>}, {pipeline_mode = #tpu.pipeline_mode<synchronous>, transform_indices = @transform_1, window_bounds = array<i64: 1, 4, 1>}, {pipeline_mode = #tpu.pipeline_mode<synchronous>, transform_indices = @transform_2, window_bounds = array<i64: 1, 4, 1>}, {transform_indices = @transform_3, window_bounds = array<i64: 16, 4, 64>}]} {
    %c0 = arith.constant 0 : index
    %c0_0 = arith.constant 0 : index
    %c0_1 = arith.constant 0 : index
    %0 = vector.load %arg2[%c0, %c0_0, %c0_1] : memref<1x4x1xf32, #tpu.memory_space<vmem>>, vector<1x4x1xf32>
    %c0_2 = arith.constant 0 : index
    %c0_3 = arith.constant 0 : index
    %c0_4 = arith.constant 0 : index
    %1 = vector.load %arg3[%c0_2, %c0_3, %c0_4] : memref<1x4x1xf32, #tpu.memory_space<vmem>>, vector<1x4x1xf32>
    %c0_i32 = arith.constant 0 : i32
    %c16_i32 = arith.constant 16 : i32
    %2 = arith.muli %c0_i32, %c16_i32 : i32
    %3 = tpu.assume_multiple %2, 16 : i32
    %4 = arith.index_cast %3 : i32 to index
    %c0_5 = arith.constant 0 : index
    %c0_6 = arith.constant 0 : index
    %5 = vector.load %arg1[%4, %c0_5, %c0_6] : memref<16x4x64xf32, #tpu.memory_space<vmem>>, vector<16x4x64xf32>
    %cst = arith.constant dense<0.000000e+00> : vector<4x64xf32>
    %6 = vector.multi_reduction <add>, %5, %cst [0] : vector<16x4x64xf32> to vector<4x64xf32>
    %7 = vector.shape_cast %6 : vector<4x64xf32> to vector<1x4x64xf32>
    %8 = arith.mulf %5, %5 : vector<16x4x64xf32>
    %cst_7 = arith.constant dense<0.000000e+00> : vector<4x64xf32>
    %9 = vector.multi_reduction <add>, %8, %cst_7 [0] : vector<16x4x64xf32> to vector<4x64xf32>
    %10 = vector.shape_cast %9 : vector<4x64xf32> to vector<1x4x64xf32>
    %cst_8 = arith.constant dense<0.000000e+00> : vector<1x4xf32>
    %11 = vector.multi_reduction <add>, %7, %cst_8 [2] : vector<1x4x64xf32> to vector<1x4xf32>
    %12 = vector.shape_cast %11 : vector<1x4xf32> to vector<1x4x1xf32>
    %cst_9 = arith.constant dense<0.000000e+00> : vector<1x4xf32>
    %13 = vector.multi_reduction <add>, %10, %cst_9 [2] : vector<1x4x64xf32> to vector<1x4xf32>
    %14 = vector.shape_cast %13 : vector<1x4xf32> to vector<1x4x1xf32>
    %cst_10 = arith.constant 1.024000e+03 : f32
    %15 = vector.broadcast %cst_10 : f32 to vector<1x4x1xf32>
    %16 = arith.divf %12, %15 : vector<1x4x1xf32>
    %cst_11 = arith.constant 1.024000e+03 : f32
    %17 = vector.broadcast %cst_11 : f32 to vector<1x4x1xf32>
    %18 = arith.divf %14, %17 : vector<1x4x1xf32>
    %19 = arith.mulf %16, %16 : vector<1x4x1xf32>
    %20 = arith.subf %18, %19 : vector<1x4x1xf32>
    %cst_12 = arith.constant 0.000000e+00 : f32
    %21 = vector.broadcast %cst_12 : f32 to vector<1x4x1xf32>
    %22 = arith.maximumf %20, %21 : vector<1x4x1xf32>
    %cst_13 = arith.constant 9.99999974E-6 : f32
    %23 = vector.broadcast %cst_13 : f32 to vector<1x4x1xf32>
    %24 = arith.addf %22, %23 : vector<1x4x1xf32>
    %25 = math.rsqrt %24 : vector<1x4x1xf32>
    %26 = arith.mulf %0, %25 : vector<1x4x1xf32>
    %27 = arith.mulf %16, %26 : vector<1x4x1xf32>
    %28 = arith.subf %1, %27 : vector<1x4x1xf32>
    %29 = vector.broadcast %26 : vector<1x4x1xf32> to vector<16x4x64xf32>
    %30 = arith.mulf %5, %29 : vector<16x4x64xf32>
    %31 = vector.broadcast %28 : vector<1x4x1xf32> to vector<16x4x64xf32>
    %32 = arith.addf %30, %31 : vector<16x4x64xf32>
    %33 = arith.index_cast %3 : i32 to index
    %c0_14 = arith.constant 0 : index
    %c0_15 = arith.constant 0 : index
    %34 = vector.load %arg4[%33, %c0_14, %c0_15] : memref<16x4x64xf32, #tpu.memory_space<vmem>>, vector<16x4x64xf32>
    tpu.vector_store %arg4[%33, %c0_14, %c0_15], %32 {strides = array<i32>} : memref<16x4x64xf32, #tpu.memory_space<vmem>>, vector<16x4x64xf32>,
    %c1_i32 = arith.constant 1 : i32
    return
  }
  func.func @transform_0(%arg0: i32) -> (i32, i32, i32) {
    %c0_i32 = arith.constant 0 : i32
    %c0_i32_0 = arith.constant 0 : i32
    %c0_i32_1 = arith.constant 0 : i32
    return %arg0, %c0_i32, %c0_i32_0 : i32, i32, i32
  }
  func.func @transform_1(%arg0: i32) -> (i32, i32, i32) {
    %c0_i32 = arith.constant 0 : i32
    %c0_i32_0 = arith.constant 0 : i32
    %c0_i32_1 = arith.constant 0 : i32
    %c0_i32_2 = arith.constant 0 : i32
    return %c0_i32, %c0_i32_0, %c0_i32_1 : i32, i32, i32
  }
  func.func @transform_2(%arg0: i32) -> (i32, i32, i32) {
    %c0_i32 = arith.constant 0 : i32
    %c0_i32_0 = arith.constant 0 : i32
    %c0_i32_1 = arith.constant 0 : i32
    %c0_i32_2 = arith.constant 0 : i32
    return %c0_i32, %c0_i32_0, %c0_i32_1 : i32, i32, i32
  }
  func.func @transform_3(%arg0: i32) -> (i32, i32, i32) {
    %c0_i32 = arith.constant 0 : i32
    %c0_i32_0 = arith.constant 0 : i32
    %c0_i32_1 = arith.constant 0 : i32
    return %arg0, %c0_i32, %c0_i32_0 : i32, i32, i32
  }
}

</mosaic_0001>

<bundles_post_ra>
// kernel: tpu_custom_call.1
= control target key start
LH: loop header
LB: loop body
LE: loop exit
PB: predicated region body
PF: predicated region fallthrough
CT: control target
= control target key end

     0   :  { %8 = vsyncpa [#allocation3], 0  ;;  %s986_s0 = inlined_call_operand.hbm [shape: f32[32,4,64], index: 0, kind: input, shape index: {}]   ;;  %s987_s1 = inlined_call_operand.vmem [shape: f32[1,4,1], index: 1, kind: input, shape index: {}]   ;;  %s988_s2 = inlined_call_operand.vmem [shape: f32[1,4,1], index: 2, kind: input, shape index: {}]   ;;  %s989_s3 = inlined_call_operand.hbm [shape: f32[32,4,64], index: 3, kind: output, shape index: {}]  }
   0x1   :  { %10 = vsyncpa [#allocation3 + $0x1], 0 }
   0x2   :  { %11 = vsyncpa [#allocation4], 0 }
   0x3   :  { %13 = vsyncpa [#allocation4 + $0x1], 0  ;;  %s645_s12 = smov 0   ;;  %s647_s13 = smov 0  }
   0x4   :  { %s649_s14 = smov 0   ;;  %s651_s15 = smov 0  }
   0x5 LB: > { %s666_s16 = sadd.s32 4294967295, %s616_s15   ;;  %s453_s17 = sadd.s32 4294967294, %s616_s15   ;;  %s616_s15 = sphi %s651_s15, %s1004_s15   ;;  %s612_s14 = sphi %s649_s14, %s1003_s14   ;;  %s608_s13 = sphi %s647_s13, %s1002_s13   ;;  %s604_s12 = sphi %s645_s12, %s1001_s12  }
   0x6   : > { %s670_s18 = sadd.s32 1, %s616_s15   ;;  %s26_s19 = sadd.s32 1, %s612_s14 }
   0x7   : > { %s23_s20 = ssub.s32 %s616_s15, %s670_s18  ;;  %p33_p0 = scmp.ne.s32.totalorder %s612_s14, %s608_s13 }
   0x8   : > { %p24_p1 = scmp.eq.s32.totalorder %s23_s20, 0  ;;  %p34_p2 = scmp.eq.s32.totalorder %s616_s15, 0 }
   0x9   : > { %p39_p3 = scmp.ne.s32.totalorder %s608_s13, %s604_s12  ;;  %p40_p4 = scmp.eq.s32.totalorder %s666_s16, 0 }
   0xa   : > { %s682_s21 = scalar_select %p24_p1, %s612_s14, %s26_s19  }
   0xb   : > { %p684_p5 = por %p34_p2, %p33_p0  ;;  %p688_p6 = por %p40_p4, %p39_p3 }
   0xc   : > { %p105_p7 = scmp.eq.s32.totalorder %s666_s16, 1  ;;  %p111_p8 = scmp.eq.s32.totalorder %s453_s17, 1 }
   0xd   : > { %s993_s23 = scalar_select %p688_p6, 1, 0 }
   0xe   : > { %p481_p10 = scmp.lt.s32.totalorder %s616_s15, 2  ;;  %p695_p11 = por %p105_p7, %p33_p0 }
   0xf   : > { %p699_p12 = por %p111_p8, %p39_p3  ;;  %s137_s26 = sand.u32 1, %s612_s14  }
  0x10   : > { %s994_s24 = scalar_select %p695_p11, 1, 0 }
  0x11   : > { %s995_s25 = scalar_select %p699_p12, 1, 0 }
  0x12   : > { %s467_s27 = sshll.u32 %s616_s15, 10  ;;  %s456_s28 = sshll.u32 %s137_s26, 6 }
  0x13   : > { %s708_s4 = scalar_lea.hbm %s986_s0, %s467_s27  ;;  %s141_s5 = scalar_lea.vmem [#allocation2], %s456_s28 }
  0x14   : > { %s148_s6 = sshll.u32 %s141_s5, 4  ;;  %p712_p13 = pnand %p481_p10, %p684_p5  ;;  %s716_s6 = int_to_ptr.vmem [resolvable:$true] %s148_s6 }
  0x15   : > { %s718_s8 = scalar_lea.sflag [#allocation3], %s137_s26  ;;  %s524_s9 = scalar_lea.hbm %s708_s4, 1024 }
  0x16   : > { %p525_p0 = scmp.ne.s32.totalorder %s708_s4, %s524_s9  ;;  %p526_p1 = pneg %p712_p13 }
  0x17   : > { %s529_s17 = scalar_lea.hbm %s986_s0, 2048  ;;  %p530_p4 = scmp.lt.s32.totalorder %s708_s4, %s986_s0 }
  0x18   : > { %p527_p2 = pnand %p526_p1, %p525_p0  ;;  %p531_p5 = scmp.lt.s32.totalorder %s529_s17, %s524_s9 }
  0x1a   : > { %p528_p3 = pneg %p527_p2  ;;  %p532_p7 = por %p531_p5, %p530_p4 }
  0x1c   : > { %p533_p8 = pnand %p532_p7, %p528_p3 }
  0x1e   : > { %536 = shalt.err (!%p533_p8)
}
  0x1f   : > { %s537_s22 = scalar_lea.vmem %s716_s6, 1024  ;;  %s618_s26 = smov [#allocation2]  }
  0x20   : > { %p538_p10 = scmp.ne.s32.totalorder %s716_s6, %s537_s22  ;;  %s542_s27 = sshll.u32 %s618_s26, 4  ;;  %s543_s27 = int_to_ptr.vmem [resolvable:$false] %s542_s27 }
  0x21   : > { %s544_s28 = scalar_lea.vmem %s543_s27, 2048  ;;  %p545_p2 = scmp.lt.s32.totalorder %s716_s6, %s543_s27 }
  0x22   : > { %p540_p9 = pnand %p538_p10, %p526_p1  ;;  %p546_p12 = scmp.lt.s32.totalorder %s544_s28, %s537_s22 }
  0x24   : > { %p541_p0 = pneg %p540_p9  ;;  %p547_p11 = por %p546_p12, %p545_p2 }
  0x26   : > { %p548_p6 = pnand %p547_p11, %p541_p0 }
  0x28   : > { %551 = shalt.err (!%p548_p6)
}
  0x29   : > { %s619_s29 = smov 64   ;;  %s620_s30 = smov 4  }
  0x2a   : > { %476 = dma.hbm_to_vmem [thread:$0]  (!%p712_p13), %s708_s4, 1024, %s716_s6, %s718_s8, %s619_s29, %s619_s29, %s620_s30  }
  0x2b   : > { %p459_p9 = scmp.ge.s32.totalorder %s616_s15, 1  ;;  %p156_p1 = scmp.lt.s32.totalorder %s616_s15, 3 }
  0x2d   : > { %p157_p3 = pnand %p459_p9, %p156_p1 }
  0x2e   : > { %s742_s5 = sand.u32 (!%p157_p3), 1, %s608_s13   ;;  %p997_p6 = scmp.ne.s32.totalorder (!%p157_p3), %s993_s23, 0 }
  0x2f   : > { %160 = sbr.rel (%p157_p3) target bundleno = 404 (0x194), region = 32  ;;  %s460_s9 = sshll.u32 (!%p157_p3), %s742_s5, 6 }
  0x30   : > { %s163_s10 = scalar_lea.sflag (!%p157_p3), [#allocation3], %s742_s5  ;;  %s748_s11 = scalar_lea.vmem (!%p157_p3), [#allocation2], %s460_s9 }
  0x34   : > { %595 = dma.done.wait (%p997_p6), %s163_s10, 1024  }
  0x35   : > { %597 = vsyncadd (%p997_p6), %s163_s10, 4294966272  ;;  %vm211_vm0 = vcmask 519168   ;;  %v755_v0 = vld [vmem:[%s748_s11] sm:$0xf]  ;;  %v758_v1 = vld [vmem:[%s748_s11 + $0x4] sm:$0xf] }
  0x36   : > { %v761_v2 = vld [vmem:[%s748_s11 + $0x8] sm:$0xf]  ;;  %v764_v3 = vld [vmem:[%s748_s11 + $0xc] sm:$0xf]  ;;  %v212_v4 = vsel %vm211_vm0, %v755_v0, 0.0  ;;  %v213_v5 = vsel %vm211_vm0, %v758_v1, 0.0  ;;  %v243_v9 = vmul.f32 %v755_v0, %v755_v0  ;;  %v244_v11 = vmul.f32 %v758_v1, %v758_v1 }
  0x37   : > { %v215_v6 = vsel %vm211_vm0, %v761_v2, 0.0  ;;  %v773_v7 = vld [vmem:[%s748_s11 + $0x10] sm:$0xf]  ;;  %v214_v8 = vadd.f32 %v213_v5, %v212_v4  ;;  %v217_v10 = vsel %vm211_vm0, %v764_v3, 0.0  ;;  %v245_v12 = vmul.f32 %v761_v2, %v761_v2  ;;  %v784_v13 = vld [vmem:[%s748_s11 + $0x14] sm:$0xf] }
  0x38   : > { %v219_v15 = vsel %vm211_vm0, %v773_v7, 0.0  ;;  %v246_v16 = vmul.f32 %v764_v3, %v764_v3  ;;  %v791_v17 = vld [vmem:[%s748_s11 + $0x18] sm:$0xf]  ;;  %v259_v19 = vsel %vm211_vm0, %v243_v9, 0.0  ;;  %v221_v20 = vsel %vm211_vm0, %v784_v13, 0.0  ;;  %s468_s8 = sshll.u32 %s666_s16, 10 }
  0x39   : > { %v216_v14 = vadd.f32 %v215_v6, %v214_v8  ;;  %v247_v21 = vmul.f32 %v773_v7, %v773_v7  ;;  %v260_v22 = vsel %vm211_vm0, %v244_v11, 0.0  ;;  %v262_v23 = vsel %vm211_vm0, %v245_v12, 0.0  ;;  %v801_v24 = vld [vmem:[%s748_s11 + $0x1c] sm:$0xf]  ;;  %v809_v30 = vld [vmem:[%s748_s11 + $0x20] sm:$0xf]  ;;  %s917_s22 = scalar_lea.hbm %s989_s3, %s468_s8 }
  0x3a   : > { %v261_v26 = vadd.f32 %v260_v22, %v259_v19  ;;  %v223_v27 = vsel %vm211_vm0, %v791_v17, 0.0  ;;  %v248_v28 = vmul.f32 %v784_v13, %v784_v13  ;;  %v264_v29 = vsel %vm211_vm0, %v246_v16, 0.0  ;;  %v817_v36 = vld [vmem:[%s748_s11 + $0x24] sm:$0xf]  ;;  %v825_v42 = vld [vmem:[%s748_s11 + $0x28] sm:$0xf] }
  0x3b   : > { %v218_v18 = vadd.f32 %v217_v10, %v216_v14  ;;  %v225_v33 = vsel %vm211_vm0, %v801_v24, 0.0  ;;  %v249_v34 = vmul.f32 %v791_v17, %v791_v17  ;;  %v266_v35 = vsel %vm211_vm0, %v247_v21, 0.0  ;;  %v833_v48 = vld [vmem:[%s748_s11 + $0x2c] sm:$0xf]  ;;  %v841_v54 = vld [vmem:[%s748_s11 + $0x30] sm:$0xf] }
  0x3c   : > { %v263_v32 = vadd.f32 %v262_v23, %v261_v26  ;;  %v227_v39 = vsel %vm211_vm0, %v809_v30, 0.0  ;;  %v250_v40 = vmul.f32 %v801_v24, %v801_v24  ;;  %v268_v41 = vsel %vm211_vm0, %v248_v28, 0.0  ;;  %v849_v60 = vld [vmem:[%s748_s11 + $0x34] sm:$0xf]  ;;  %v857_v6 = vld [vmem:[%s748_s11 + $0x38] sm:$0xf] }
  0x3d   : > { %v220_v25 = vadd.f32 %v219_v15, %v218_v18  ;;  %v229_v45 = vsel %vm211_vm0, %v817_v36, 0.0  ;;  %v251_v46 = vmul.f32 %v809_v30, %v809_v30  ;;  %v270_v47 = vsel %vm211_vm0, %v249_v34, 0.0  ;;  %v210_v14 = vld [vmem:[%s748_s11 + $0x3c] sm:$0xf]  ;;  %s903_s17 = scalar_lea.vmem [#allocation5], %s460_s9  ;;  %s367_s26 = scalar_lea.sflag [#allocation4], %s742_s5 }
  0x3e   : > { %v265_v38 = vadd.f32 %v264_v29, %v263_v32  ;;  %v231_v51 = vsel %vm211_vm0, %v825_v42, 0.0  ;;  %v252_v52 = vmul.f32 %v817_v36, %v817_v36  ;;  %v272_v53 = vsel %vm211_vm0, %v250_v40, 0.0  ;;  %s380_s19 = sshll.u32 %s903_s17, 4  ;;  %p998_p12 = scmp.ne.s32.totalorder %s994_s24, 0  ;;  %s919_s19 = int_to_ptr.vmem [resolvable:$true] %s380_s19 }
  0x3f   : > { %v222_v31 = vadd.f32 %v221_v20, %v220_v25  ;;  %v233_v57 = vsel %vm211_vm0, %v833_v48, 0.0  ;;  %v253_v58 = vmul.f32 %v825_v42, %v825_v42  ;;  %v274_v59 = vsel %vm211_vm0, %v251_v46, 0.0  ;;  %s552_s27 = scalar_lea.vmem %s919_s19, 1024  ;;  %s622_s28 = smov [#allocation5]  }
  0x40   : > { %v267_v44 = vadd.f32 %v266_v35, %v265_v38  ;;  %v235_v63 = vsel %vm211_vm0, %v841_v54, 0.0  ;;  %v254_v4 = vmul.f32 %v833_v48, %v833_v48  ;;  %v276_v5 = vsel %vm211_vm0, %v252_v52, 0.0  ;;  %p553_p11 = scmp.ne.s32.totalorder %s919_s19, %s552_s27  ;;  %s556_s29 = sshll.u32 %s622_s28, 4  ;;  %s557_s29 = int_to_ptr.vmem [resolvable:$false] %s556_s29 }
  0x41   : > { %v224_v37 = vadd.f32 %v223_v27, %v222_v31  ;;  %v237_v10 = vsel %vm211_vm0, %v849_v60, 0.0  ;;  %v255_v11 = vmul.f32 %v841_v54, %v841_v54  ;;  %v278_v12 = vsel %vm211_vm0, %v253_v58, 0.0  ;;  %s558_s30 = scalar_lea.vmem %s557_s29, 2048  ;;  %p559_p5 = scmp.lt.s32.totalorder %s919_s19, %s557_s29 }
  0x42   : > { %v269_v50 = vadd.f32 %v268_v41, %v267_v44  ;;  %v239_v18 = vsel %vm211_vm0, %v857_v6, 0.0  ;;  %v256_v19 = vmul.f32 %v849_v60, %v849_v60  ;;  %v280_v20 = vsel %vm211_vm0, %v254_v4, 0.0  ;;  %p554_p13 = pnand %p553_p11, %p998_p12  ;;  %p560_p7 = scmp.lt.s32.totalorder %s558_s30, %s552_s27 }
  0x43   : > { %v226_v43 = vadd.f32 %v225_v33, %v224_v37  ;;  %v241_v23 = vsel %vm211_vm0, %v210_v14, 0.0  ;;  %v257_v25 = vmul.f32 %v857_v6, %v857_v6  ;;  %v282_v26 = vsel %vm211_vm0, %v255_v11, 0.0 }
  0x44   : > { %v271_v56 = vadd.f32 %v270_v47, %v269_v50  ;;  %v258_v29 = vmul.f32 %v210_v14, %v210_v14  ;;  %v284_v31 = vsel %vm211_vm0, %v256_v19, 0.0  ;;  %p555_p4 = pneg %p554_p13  ;;  %p561_p8 = por %p560_p7, %p559_p5 }
  0x45   : > { %v228_v49 = vadd.f32 %v227_v39, %v226_v43  ;;  %v286_v34 = vsel %vm211_vm0, %v257_v25, 0.0  ;;  %v621_v43 = vmov 0  }
  0x46   : > { %v273_v62 = vadd.f32 %v272_v53, %v271_v56  ;;  %v288_v38 = vsel %vm211_vm0, %v258_v29, 0.0  ;;  %520 = vset.pattern.permute.xlu1 %v621_v43  ;;  %521 = vset.pattern.permute.xlu0 %v621_v43  ;;  %v191_v53 = vld [vmem:[%s987_s1] sm:$0xf]  ;;  %p562_p10 = pnand %p561_p8, %p555_p4 }
  0x47   : > { %v230_v55 = vadd.f32 %v229_v45, %v228_v49 }
  0x48   : > { %v275_v9 = vadd.f32 %v274_v59, %v273_v62 }
  0x49   : > { %v232_v61 = vadd.f32 %v231_v51, %v230_v55 }
  0x4a   : > { %v277_v16 = vadd.f32 %v276_v5, %v275_v9 }
  0x4b   : > { %v234_v8 = vadd.f32 %v233_v57, %v232_v61  ;;  %v192_v57 = vld [vmem:[%s988_s2] sm:$0xf] }
  0x4c   : > { %v279_v22 = vadd.f32 %v278_v12, %v277_v16 }
  0x4d   : > { %v236_v15 = vadd.f32 %v235_v63, %v234_v8 }
  0x4e   : > { %v281_v28 = vadd.f32 %v280_v20, %v279_v22 }
  0x4f   : > { %v238_v21 = vadd.f32 %v237_v10, %v236_v15 }
  0x50   : > { %v283_v33 = vadd.f32 %v282_v26, %v281_v28 }
  0x51   : > { %v240_v27 = vadd.f32 %v239_v18, %v238_v21 }
  0x52   : > { %v285_v37 = vadd.f32 %v284_v31, %v283_v33 }
  0x53   : > { %v242_v32 = vadd.f32 %v241_v23, %v240_v27 }
  0x54   : > { %v287_v39 = vadd.f32 %v286_v34, %v285_v37 }
  0x55   : > { %v290_v35 = vsel %vm211_vm0, %v242_v32, 0.0 }
  0x56   : > { %291 = vadd.xlane.f32.xlu0 %v290_v35  ;;  %v289_v40 = vadd.f32 %v288_v38, %v287_v39 }
  0x58   : > { %v293_v41 = vsel %vm211_vm0, %v289_v40, 0.0 }
  0x5a   : > { %294 = vadd.xlane.f32.xlu0 %v293_v41 }
  0xdf   : > { %v292_v44 = vpop.xlane.xlu0 %291 }
  0xe0   : > { %v297_v45 = vmul.f32 0.0009765625, %v292_v44 }
  0xe2   : > { %v299_v47 = vmul.f32 %v297_v45, %v297_v45 }
  0xe3   : > { %v295_v46 = vpop.xlane.xlu0 %294 }
  0xe4   : > { %v298_v49 = vmul.f32 0.0009765625, %v295_v46 }
  0xe6   : > { %v300_v50 = vsub.f32 %v298_v49, %v299_v47 }
  0xe8   : > { %v301_v51 = vmax.f32 %v300_v50, 0.0 }
  0xea   : > { %v302_v52 = vadd.f32 1e-05, %v301_v51 }
  0xec   : > { %522 = vrsqrt.f32 %v302_v52 }
  0xf9   : > { %v523_v55 = vpop.eup %522 }
  0xfa   : > { %v304_v56 = vmul.f32 %v523_v55, %v191_v53 }
  0xfc   : > { %309 = vperm.xlu1 %520, %v304_v56   ;;  %v305_v58 = vmul.f32 %v304_v56, %v297_v45 }
  0xfe   : > { %v306_v59 = vsub.f32 %v192_v57, %v305_v58 }
 0x100   : > { %330 = vperm.xlu1 %520, %v306_v59  }
 0x177   : > { %v310_v61 = vpop.permute.xlu1 %309 }
 0x178   : > { %v312_v62 = vmul.f32 %v310_v61, %v755_v0  ;;  %v313_v63 = vmul.f32 %v310_v61, %v758_v1  ;;  %v314_v4 = vmul.f32 %v310_v61, %v761_v2  ;;  %v315_v5 = vmul.f32 %v310_v61, %v764_v3 }
 0x179   : > { %v316_v8 = vmul.f32 %v310_v61, %v773_v7  ;;  %v317_v9 = vmul.f32 %v310_v61, %v784_v13  ;;  %v318_v10 = vmul.f32 %v310_v61, %v791_v17  ;;  %v319_v11 = vmul.f32 %v310_v61, %v801_v24 }
 0x17a   : > { %v320_v12 = vmul.f32 %v310_v61, %v809_v30  ;;  %v321_v0 = vmul.f32 %v310_v61, %v817_v36  ;;  %v322_v1 = vmul.f32 %v310_v61, %v825_v42  ;;  %v323_v15 = vmul.f32 %v310_v61, %v833_v48 }
 0x17b   : > { %v324_v2 = vmul.f32 %v310_v61, %v841_v54  ;;  %v325_v3 = vmul.f32 %v310_v61, %v849_v60  ;;  %v326_v7 = vmul.f32 %v310_v61, %v857_v6  ;;  %v327_v16 = vmul.f32 %v310_v61, %v210_v14  ;;  %v331_v13 = vpop.permute.xlu1 %330 }
 0x17c   : > { %v333_v17 = vadd.f32 %v331_v13, %v312_v62  ;;  %v334_v24 = vadd.f32 %v331_v13, %v313_v63  ;;  %v335_v30 = vadd.f32 %v331_v13, %v314_v4  ;;  %v336_v36 = vadd.f32 %v331_v13, %v315_v5 }
 0x17d   : > { %v337_v42 = vadd.f32 %v331_v13, %v316_v8  ;;  %v338_v48 = vadd.f32 %v331_v13, %v317_v9  ;;  %v339_v54 = vadd.f32 %v331_v13, %v318_v10  ;;  %v340_v60 = vadd.f32 %v331_v13, %v319_v11 }
 0x17e   : > { %v341_v6 = vadd.f32 %v331_v13, %v320_v12  ;;  %v342_v14 = vadd.f32 %v331_v13, %v321_v0  ;;  %v343_v18 = vadd.f32 %v331_v13, %v322_v1  ;;  %v344_v19 = vadd.f32 %v331_v13, %v323_v15  ;;  %350 = vst.msk [vmem:[%s903_s17] sm:$0xf] %vm211_vm0, %v333_v17 }
 0x17f   : > { %351 = vst.msk [vmem:[%s903_s17 + $0x4] sm:$0xf] %vm211_vm0, %v334_v24  ;;  %352 = vst.msk [vmem:[%s903_s17 + $0x8] sm:$0xf] %vm211_vm0, %v335_v30  ;;  %v345_v20 = vadd.f32 %v331_v13, %v324_v2  ;;  %v346_v21 = vadd.f32 %v331_v13, %v325_v3  ;;  %v347_v22 = vadd.f32 %v331_v13, %v326_v7 }
 0x180   : > { %353 = vst.msk [vmem:[%s903_s17 + $0xc] sm:$0xf] %vm211_vm0, %v336_v36  ;;  %v348_v23 = vadd.f32 %v331_v13, %v327_v16  ;;  %354 = vst.msk [vmem:[%s903_s17 + $0x10] sm:$0xf] %vm211_vm0, %v337_v42 }
 0x181   : > { %355 = vst.msk [vmem:[%s903_s17 + $0x14] sm:$0xf] %vm211_vm0, %v338_v48  ;;  %356 = vst.msk [vmem:[%s903_s17 + $0x18] sm:$0xf] %vm211_vm0, %v339_v54 }
 0x182   : > { %357 = vst.msk [vmem:[%s903_s17 + $0x1c] sm:$0xf] %vm211_vm0, %v340_v60  ;;  %358 = vst.msk [vmem:[%s903_s17 + $0x20] sm:$0xf] %vm211_vm0, %v341_v6 }
 0x183   : > { %359 = vst.msk [vmem:[%s903_s17 + $0x24] sm:$0xf] %vm211_vm0, %v342_v14  ;;  %360 = vst.msk [vmem:[%s903_s17 + $0x28] sm:$0xf] %vm211_vm0, %v343_v18 }
 0x184   : > { %361 = vst.msk [vmem:[%s903_s17 + $0x2c] sm:$0xf] %vm211_vm0, %v344_v19  ;;  %362 = vst.msk [vmem:[%s903_s17 + $0x30] sm:$0xf] %vm211_vm0, %v345_v20 }
 0x185   : > { %363 = vst.msk [vmem:[%s903_s17 + $0x34] sm:$0xf] %vm211_vm0, %v346_v21  ;;  %364 = vst.msk [vmem:[%s903_s17 + $0x38] sm:$0xf] %vm211_vm0, %v347_v22 }
 0x186   : > { %365 = vst.msk [vmem:[%s903_s17 + $0x3c] sm:$0xf] %vm211_vm0, %v348_v23 }
 0x187   : > { %565 = shalt.err (!%p562_p10)
}
 0x188   : > { %s566_s9 = scalar_lea.hbm %s917_s22, 1024  ;;  %s570_s23 = scalar_lea.hbm %s989_s3, 2048 }
 0x189   : > { %p567_p0 = scmp.ne.s32.totalorder %s917_s22, %s566_s9  ;;  %p571_p1 = scmp.lt.s32.totalorder %s917_s22, %s989_s3 }
 0x18a   : > { %p572_p3 = scmp.lt.s32.totalorder %s570_s23, %s566_s9 }
 0x18b   : > { %p568_p2 = pnand %p567_p0, %p998_p12 }
 0x18c   : > { %p573_p6 = por %p572_p3, %p571_p1 }
 0x18d   : > { %p569_p9 = pneg %p568_p2 }
 0x18f   : > { %p574_p11 = pnand %p573_p6, %p569_p9 }
 0x191   : > { %577 = shalt.err (!%p574_p11)
}
 0x192   : > { %s623_s7 = smov 64   ;;  %s624_s8 = smov 4  }
 0x193   : > { %471 = dma.vmem_to_hbm [thread:$0]  (%p998_p12), %s919_s19, 1024, %s917_s22, %s367_s26, %s623_s7, %s623_s7, %s624_s8  }
 0x194 PF: > { %s395_s17 = sand.u32 1, %s604_s12   ;;  %p999_p13 = scmp.ne.s32.totalorder %s995_s25, 0 }
 0x195   : > { %p1000_p4 = scmp.ge.s32.totalorder %s616_s15, 2  ;;  %s396_s16 = scalar_lea.sflag [#allocation4], %s395_s17 }
 0x197   : > { %p478_p5 = pnand %p1000_p4, %p999_p13 }
 0x199   : > { %p479_p7 = pneg %p478_p5 }
 0x19b   : > { %599 = dma.done.wait (%p479_p7), %s396_s16, 1024  }
 0x19c   : > { %601 = vsyncadd (%p479_p7), %s396_s16, 4294966272  ;;  %p16_p8 = scmp.ge.s32.totalorder %s670_s18, 4   ;;  %s1001_s12 = smov %s608_s13 }
 0x19d   : > { %s1002_s13 = smov %s612_s14  ;;  %s1003_s14 = smov %s682_s21 }
 0x19e   : > { %s1004_s15 = smov %s670_s18  ;;  %18 = sbr.rel (!%p16_p8) target bundleno = 5 (0x5), region = 79 }
 0x1a3   :  { %401 = vsyncpa [#allocation3], 1 }
 0x1a4   :  { %403 = vsyncpa [#allocation3 + $0x1], 1 }
 0x1a5   :  { %404 = vsyncpa [#allocation4], 1 }
 0x1a6   :  { %406 = vsyncpa [#allocation4 + $0x1], 1 }

</bundles_post_ra>
